<compile_context>
chip_gen: v6e
topology: v6e:2x2x1
jax: 0.10.0
libtpu: 0.0.40
codegen_flags: <defaults>
</compile_context>

<pallas_src>
import jax
import jax.numpy as jnp
from jax.experimental import pallas as pl
from jax.experimental.pallas import tpu as pltpu

FMAX = float(jnp.finfo(jnp.float32).max)
BN_EPS = 1e-5
LRELU_SLOPE = 0.01
_VMEM_LIMIT_BYTES = 48 * 1024 * 1024   # > v5e 16 MiB / v6e 32 MiB scoped defaults


def _compiler_params():
    return pltpu.CompilerParams(
        dimension_semantics=("parallel",),
        vmem_limit_bytes=_VMEM_LIMIT_BYTES,
    )


def _const_spec(shape):
    """Full-extent block, same block for every grid step (weights)."""
    zeros = (0,) * len(shape)
    return pl.BlockSpec(tuple(shape), lambda b: zeros)


def _block_spec(shape, bblk=1):
    """(bblk, d1, d2, ...) block indexed by the batch grid axis."""
    tail = (0,) * (len(shape) - 1)
    return pl.BlockSpec((bblk,) + tuple(shape[1:]), lambda b: (b,) + tail)


# ------------------------------ in-kernel helpers --------------------------- #

def _shift_lanes(x, direction):
    """Shifted copy of x along the lane (time) axis with zero fill.

    direction=+1: out[:, j] = x[:, j-1] (out[:, 0]  = 0)  -> conv tap k=0
    direction=-1: out[:, j] = x[:, j+1] (out[:, -1] = 0)  -> conv tap k=2
    """
    c, t = x.shape
    if t % 128 == 0:
        # Lane-aligned width: XLU rotate + lane-iota mask (no relayout copy).
        lane = jax.lax.broadcasted_iota(jnp.int32, (c, t), 1)
        if direction > 0:
            return jnp.where(lane == 0, jnp.zeros_like(x),
                             pltpu.roll(x, 1, axis=1))
        return jnp.where(lane == t - 1, jnp.zeros_like(x),
                         pltpu.roll(x, t - 1, axis=1))
    # Unaligned (toy) widths: fixed-width concat shift (same-width buffers).
    zcol = jnp.zeros((c, 1), x.dtype)
    if direction > 0:
        return jnp.concatenate([zcol, x[:, : t - 1]], axis=1)
    return jnp.concatenate([x[:, 1:], zcol], axis=1)


def _conv3(x_f32, w_ref, b_ref):
    """K=3, pad=1 Conv1d as ONE stacked bf16 matmul: (Cout,3C)@(3C,T) + bias."""
    xb = x_f32.astype(jnp.bfloat16)
    rhs = jnp.concatenate(
        [_shift_lanes(xb, +1), xb, _shift_lanes(xb, -1)], axis=0)      # (3C, T)
    return jnp.dot(w_ref[...], rhs, preferred_element_type=jnp.float32) + b_ref[...]


# ----------------------------- Pallas kernels ------------------------------ #

def _make_stem_kernel(*, rows, fold_scale):
    """Fused init conv + BatchNorm + ReLU (+ folded normalize) per batch elem."""

    def kernel(*refs):
        if fold_scale:
            taps_ref, inv_ref, w_ref, b_ref, o_ref = refs
        else:
            taps_ref, w_ref, b_ref, o_ref = refs
        taps = taps_ref[0]                         # (K*Cin, Lout) f32
        w = w_ref[...]                             # (Cout, K*Cin) f32, BN folded
        if rows <= 8:
            # VPU broadcast-FMA; a (Cout,3)@(3,T) matmul uses ~1% of the MXU.
            acc = w[:, 0:1] * taps[0:1, :]
            for r in range(1, rows):
                acc = acc + w[:, r:r + 1] * taps[r:r + 1, :]
        else:
            acc = jnp.dot(w.astype(jnp.bfloat16), taps.astype(jnp.bfloat16),
                          preferred_element_type=jnp.float32)
        if fold_scale:
            # normalize() folded through the linear conv: conv(x/m) = conv(x)/m.
            acc = acc * inv_ref[0]
        o_ref[0] = jnp.maximum(acc + b_ref[...], 0.0)

    return kernel


def _make_block_kernel(*, first, add_attention, downsample, bblk):
    """One fully-fused ResidualBlock kernel (bblk batch elements per step)."""

    def kernel(*refs):
        o_ref = refs[-1]
        ins = refs[:-1]
        pos = 0

        def nxt():
            nonlocal pos
            r = ins[pos]
            pos += 1
            return r

        x_ref = nxt()
        if add_attention:
            fc1_w_ref, fc1_b_ref, fc2_w_ref, fc2_b_ref, sa_w_ref = (
                nxt(), nxt(), nxt(), nxt(), nxt())
        if not first:
            bn1_s_ref, bn1_h_ref = nxt(), nxt()
        w1_ref, b1_ref = nxt(), nxt()          # (Cout,3Cin) bf16, (Cout,1) f32
        w2_ref, b2_ref = nxt(), nxt()          # (Cout,3Cout) bf16, (Cout,1) f32
        if downsample:
            wd_ref, bd_ref = nxt(), nxt()      # (Cout,Cin) bf16, (Cout,1) f32

        # Python loop over the micro-batch: independent per-sample streams the
        # scheduler can interleave (attention on VPU/XLU vs. convs on the MXU).
        for i in range(bblk):
            x = x_ref[i]                        # (Cin, T) f32, T on lanes
            cin, t = x.shape
            identity = x                        # residual taken at block entry

            if add_attention:
                # ---- channel attention: single-pass sum / sum_sq / max over T
                s_x = jnp.sum(x, axis=1, keepdims=True)
                s_xx = jnp.sum(x * x, axis=1, keepdims=True)
                mx = jnp.max(x, axis=1, keepdims=True)
                mean = s_x * (1.0 / t)
                var = (s_xx - t * mean * mean) * (1.0 / max(t - 1, 1))
                std = jnp.clip(jnp.sqrt(jnp.maximum(var, 0.0)), 1e-10, FMAX)
                stats = jnp.concatenate([mean, std, mx], axis=0)       # (3C,1)
                h = jnp.dot(fc1_w_ref[...], stats,
                            preferred_element_type=jnp.float32) + fc1_b_ref[...]
                h = jnp.maximum(h, 0.0)
                ca = jnp.dot(fc2_w_ref[...], h,
                             preferred_element_type=jnp.float32) + fc2_b_ref[...]
                ca = jnp.clip(jax.nn.sigmoid(ca), 1e-6, FMAX)          # (C,1)
                x = x * ca

                # ---- spatial attention: single-pass stats over C --------------
                s_c = jnp.sum(x, axis=0, keepdims=True)
                s_cc = jnp.sum(x * x, axis=0, keepdims=True)
                smax = jnp.max(x, axis=0, keepdims=True)
                smean = s_c * (1.0 / cin)
                svar = (s_cc - cin * smean * smean) * (1.0 / max(cin - 1, 1))
                sstd = jnp.clip(jnp.sqrt(jnp.maximum(svar, 0.0)), 1e-10, FMAX)
                sstats = jnp.concatenate([smean, sstd, smax], axis=0)  # (3,T)
                z3 = jnp.zeros((3, 3), jnp.float32)
                sp = jnp.concatenate([z3, sstats, z3], axis=1)         # (3,T+6)
                wsa = sa_w_ref[...]                                    # (3,7)
                acc3 = wsa[:, 0:1] * sp[:, 0:t]
                for kk in range(1, 7):   # 21-tap VPU conv on a tiny 3-row operand
                    acc3 = acc3 + wsa[:, kk:kk + 1] * sp[:, kk:kk + t]
                sa = jnp.sum(acc3, axis=0, keepdims=True)              # (1,T)
                sa = jnp.clip(jax.nn.sigmoid(sa), 1e-6, FMAX)
                x = x * sa

            if not first:
                # folded BatchNorm1d (inference) + LeakyReLU(0.01)
                x = x * bn1_s_ref[...] + bn1_h_ref[...]
                x = jnp.where(x >= 0.0, x, LRELU_SLOPE * x)

            # ---- conv1 (BN2 + bias folded) + LeakyReLU, then conv2 + bias -----
            h1 = _conv3(x, w1_ref, b1_ref)
            h1 = jnp.where(h1 >= 0.0, h1, LRELU_SLOPE * h1)
            y = _conv3(h1, w2_ref, b2_ref)

            # ---- residual add (1x1 downsample fused) --------------------------
            if downsample:
                identity = (jnp.dot(wd_ref[...], identity.astype(jnp.bfloat16),
                                    preferred_element_type=jnp.float32)
                            + bd_ref[...])
            # Dropout2d(p=0.0) and the [:, :, None, :] round-trip are identities.
            o_ref[i] = y + identity

    return kernel


# --------------------------- folding / wrappers --------------------------- #

def _fold_bn(bn):
    gamma, beta, mean, var = bn
    inv = gamma / jnp.sqrt(var + BN_EPS)
    return inv, beta - mean * inv        # scale, shift


def _residual_block(x, bp):
    batch, cin, t = x.shape
    cout = bp["conv1_w"].shape[0]
    first = bp["first"]
    add_att = bp["add_attention"]
    down = bp["downsample"]
    bblk = 2 if (batch >= 4 and batch % 2 == 0) else 1

    args = [x]
    specs = [_block_spec(x.shape, bblk)]

    def add_const(a):
        args.append(a)
        specs.append(_const_spec(a.shape))

    if add_att:
        ap = bp["att"]
        add_const(ap["fc1_w"])                          # (H, 3*Cin) f32
        add_const(ap["fc1_b"].reshape(-1, 1))           # (H, 1)
        add_const(ap["fc2_w"])                          # (Cin, H)
        add_const(ap["fc2_b"].reshape(-1, 1))           # (Cin, 1)
        add_const(ap["sa_w"].reshape(3, 7))             # (3, 7)
    if not first:
        sb, hb = _fold_bn(bp["bn1"])
        add_const(sb.reshape(cin, 1))
        add_const(hb.reshape(cin, 1))

    # conv1 with BN2 folded; weights stacked tap-major (Cout, 3*Cin) and bf16.
    s2, h2 = _fold_bn(bp["bn2"])
    w1f = bp["conv1_w"] * s2[:, None, None]             # (Cout, Cin, 3)
    b1f = bp["conv1_b"] * s2 + h2
    add_const(jnp.transpose(w1f, (0, 2, 1)).reshape(cout, 3 * cin)
              .astype(jnp.bfloat16))
    add_const(b1f.reshape(cout, 1))
    add_const(jnp.transpose(bp["conv2_w"], (0, 2, 1)).reshape(cout, 3 * cout)
              .astype(jnp.bfloat16))
    add_const(bp["conv2_b"].reshape(cout, 1))
    if down:
        add_const(bp["down_w"][:, :, 0].astype(jnp.bfloat16))   # (Cout, Cin)
        add_const(bp["down_b"].reshape(cout, 1))

    kernel = _make_block_kernel(first=first, add_attention=add_att,
                                downsample=down, bblk=bblk)
    y = pl.pallas_call(
        kernel,
        out_shape=jax.ShapeDtypeStruct((batch, cout, t), jnp.float32),
        grid=(batch // bblk,),
        in_specs=specs,
        out_specs=_block_spec((batch, cout, t), bblk),
        compiler_params=_compiler_params(),
    )(*args)

    s = bp["pool_stride"]
    if s > 1:
        # TODO(synk): fuse into the kernel epilogue (needs lane-strided stores).
        tout = t // s
        y = jnp.max(y[:, :, : tout * s].reshape(batch, cout, tout, s), axis=-1)
    return y


def rawnet_forward(params, waveform, *, normalize_input=True):
    wf = waveform.astype(jnp.float32)
    batch, cin, _ = wf.shape

    fold_scale = False
    inv = None
    if normalize_input:
        m = jnp.maximum(jnp.max(jnp.abs(wf), axis=-1, keepdims=True), 1e-8)
        if cin == 1:
            fold_scale = True
            inv = 1.0 / m        # exact; applied to the conv output in-kernel
        else:
            wf = wf / m          # per-channel scale does not commute with a
                                 # channel-mixing conv -> normalize up front

    cfg = params["init_conv"]
    k, stride, pad = cfg["kernel_size"], cfg["stride"], cfg["padding"]
    cout = params["conv1_w"].shape[0]
    if pad > 0:
        wf = jnp.pad(wf, ((0, 0), (0, 0), (pad, pad)))
    tp = wf.shape[-1]
    lout = (tp - k) // stride + 1
    rows = k * cin

    # K strided taps of the (tiny, Cin==1) waveform stacked along channels;
    # the only XLA-side patch build — all block convs shift in-VMEM.
    taps = jnp.concatenate(
        [wf[:, :, i: i + (lout - 1) * stride + 1: stride] for i in range(k)],
        axis=1,
    )  # (B, K*Cin, Lout), row index = tap*Cin + cin_idx

    sb, hb = _fold_bn(params["bn1"])
    w_f = params["conv1_w"] * sb[:, None, None]
    b_f = params["conv1_b"] * sb + hb
    wm = jnp.transpose(w_f, (0, 2, 1)).reshape(cout, rows)      # (Cout, K*Cin)
    bcol = b_f.reshape(cout, 1)

    stem_args = [taps]
    stem_specs = [_block_spec((batch, rows, lout), 1)]
    if fold_scale:
        stem_args.append(inv)
        stem_specs.append(_block_spec((batch, cin, 1), 1))
    stem_args += [wm, bcol]
    stem_specs += [_const_spec((cout, rows)), _const_spec((cout, 1))]

    x = pl.pallas_call(
        _make_stem_kernel(rows=rows, fold_scale=fold_scale),
        out_shape=jax.ShapeDtypeStruct((batch, cout, lout), jnp.float32),
        grid=(batch,),
        in_specs=stem_specs,
        out_specs=_block_spec((batch, cout, lout), 1),
        compiler_params=_compiler_params(),
    )(*stem_args)

    for bp in params["blocks"]:
        x = _residual_block(x, bp)
    return x


# ------------------------------ parameter init ------------------------------ #

def init_params(key, init_conv_params, block_setup):
    keys = iter(jax.random.split(key, 256))

    def nrm(shape, scale=0.05):
        return scale * jax.random.normal(next(keys), shape, jnp.float32)

    def bn(c):
        # (gamma, beta, running_mean, running_var)
        return (1.0 + nrm((c,)), nrm((c,)), nrm((c,)), 1.0 + jnp.abs(nrm((c,))))

    cin0 = init_conv_params["in_channels"]
    c0 = init_conv_params["out_channels"]
    k0 = init_conv_params["kernel_size"]

    params = {
        "init_conv": init_conv_params,
        "conv1_w": nrm((c0, cin0, k0)),
        "conv1_b": nrm((c0,)),
        "bn1": bn(c0),
        "blocks": [],
    }

    # First residual block uses (conv1 out_channels, block_setup[0][1]), no attention.
    setups = [(c0, block_setup[0][1], False, block_setup[0][3], True)] + [
        (f0, f1, att, ps, False) for (f0, f1, att, ps) in block_setup[1:]
    ]
    for cin, cout, att, ps, first in setups:
        bp = {
            "first": first,
            "add_attention": att,
            "pool_stride": ps,
            "downsample": cin != cout,
            "conv1_w": nrm((cout, cin, 3)),
            "conv1_b": nrm((cout,)),
            "conv2_w": nrm((cout, cout, 3)),
            "conv2_b": nrm((cout,)),
            "bn2": bn(cout),
        }
        if not first:
            bp["bn1"] = bn(cin)
        if cin != cout:
            bp["down_w"] = nrm((cout, cin, 1))
            bp["down_b"] = nrm((cout,))
        if att:
            hidden = cin // 16  # ChannelAttention1D ratio=16
            bp["att"] = {
                # PyTorch layouts: Linear (out, in), Conv1d (out, in, k)
                "fc1_w": nrm((hidden, 3 * cin)),
                "fc1_b": nrm((hidden,)),
                "fc2_w": nrm((cin, hidden)),
                "fc2_b": nrm((cin,)),
                "sa_w": nrm((1, 3, 7)),
            }
        params["blocks"].append(bp)
    return params


# ----------------------------------- main ----------------------------------- #

if __name__ == "__main__":
    # Small configuration consistent with the module's constructor arguments.
    init_conv_params = dict(
        in_channels=1, out_channels=32, stride=3, kernel_size=3, padding=0
    )
    block_setup = [
        (32, 32, True, 1),   # first block: attention disabled by RawNet, pool=1
        (32, 64, True, 2),   # attention + maxpool stride 2
        (64, 64, True, 1),   # attention, no pooling
    ]

    key = jax.random.PRNGKey(0)
    k_param, k_data = jax.random.split(key)

    params = init_params(k_param, init_conv_params, block_setup)
    waveform = jax.random.normal(k_data, (2, 1, 96), jnp.float32)  # (B, Cin=1, T)

    out = rawnet_forward(params, waveform, normalize_input=True)
    out = jax.block_until_ready(out)
    assert out.shape == (2, 64, 16), out.shape
    assert bool(jnp.all(jnp.isfinite(out)))
    print("KERNEL_OK")
</pallas_src>

<mosaic_0001>
module attributes {stable_mosaic.version = 11 : i64} {
  func.func @kernel(%arg0: i32, %arg1: memref<1x3x32xf32, #tpu.memory_space<vmem>>, %arg2: memref<1x1x1xf32, #tpu.memory_space<vmem>>, %arg3: memref<32x3xf32, #tpu.memory_space<vmem>>, %arg4: memref<32x1xf32, #tpu.memory_space<vmem>>, %arg5: memref<1x32x32xf32, #tpu.memory_space<vmem>>) attributes {dimension_semantics = [#tpu.dimension_semantics<parallel>], iteration_bounds = array<i64: 2>, scalar_prefetch = 0 : i64, scratch_operands = 0 : i64, tpu.core_type = #tpu.core_type<tc>, window_params = [{transform_indices = @transform_0, window_bounds = array<i64: 1, 3, 32>}, {transform_indices = @transform_1, window_bounds = array<i64: 1, 1, 1>}, {pipeline_mode = #tpu.pipeline_mode<synchronous>, transform_indices = @transform_2, window_bounds = array<i64: 32, 3>}, {pipeline_mode = #tpu.pipeline_mode<synchronous>, transform_indices = @transform_3, window_bounds = array<i64: 32, 1>}, {transform_indices = @transform_4, window_bounds = array<i64: 1, 32, 32>}]} {
    %c0 = arith.constant 0 : index
    %c0_0 = arith.constant 0 : index
    %c0_1 = arith.constant 0 : index
    %0 = vector.load %arg1[%c0, %c0_0, %c0_1] : memref<1x3x32xf32, #tpu.memory_space<vmem>>, vector<1x3x32xf32>
    %1 = vector.shape_cast %0 : vector<1x3x32xf32> to vector<3x32xf32>
    %c0_2 = arith.constant 0 : index
    %c0_3 = arith.constant 0 : index
    %2 = vector.load %arg3[%c0_2, %c0_3] : memref<32x3xf32, #tpu.memory_space<vmem>>, vector<32x3xf32>
    %3 = vector.extract_strided_slice %2 {offsets = [0, 0], sizes = [32, 1], strides = [1, 1]} : vector<32x3xf32> to vector<32x1xf32>
    %4 = vector.extract_strided_slice %1 {offsets = [0, 0], sizes = [1, 32], strides = [1, 1]} : vector<3x32xf32> to vector<1x32xf32>
    %5 = vector.broadcast %3 : vector<32x1xf32> to vector<32x32xf32>
    %6 = vector.broadcast %4 : vector<1x32xf32> to vector<32x32xf32>
    %7 = arith.mulf %5, %6 : vector<32x32xf32>
    %8 = vector.extract_strided_slice %2 {offsets = [0, 1], sizes = [32, 1], strides = [1, 1]} : vector<32x3xf32> to vector<32x1xf32>
    %9 = vector.extract_strided_slice %1 {offsets = [1, 0], sizes = [1, 32], strides = [1, 1]} : vector<3x32xf32> to vector<1x32xf32>
    %10 = vector.broadcast %8 : vector<32x1xf32> to vector<32x32xf32>
    %11 = vector.broadcast %9 : vector<1x32xf32> to vector<32x32xf32>
    %12 = arith.mulf %10, %11 : vector<32x32xf32>
    %13 = arith.addf %7, %12 : vector<32x32xf32>
    %14 = vector.extract_strided_slice %2 {offsets = [0, 2], sizes = [32, 1], strides = [1, 1]} : vector<32x3xf32> to vector<32x1xf32>
    %15 = vector.extract_strided_slice %1 {offsets = [2, 0], sizes = [1, 32], strides = [1, 1]} : vector<3x32xf32> to vector<1x32xf32>
    %16 = vector.broadcast %14 : vector<32x1xf32> to vector<32x32xf32>
    %17 = vector.broadcast %15 : vector<1x32xf32> to vector<32x32xf32>
    %18 = arith.mulf %16, %17 : vector<32x32xf32>
    %19 = arith.addf %13, %18 : vector<32x32xf32>
    %c0_4 = arith.constant 0 : index
    %c0_5 = arith.constant 0 : index
    %c0_6 = arith.constant 0 : index
    %20 = vector.load %arg2[%c0_4, %c0_5, %c0_6] : memref<1x1x1xf32, #tpu.memory_space<vmem>>, vector<1x1x1xf32>
    %21 = vector.shape_cast %20 : vector<1x1x1xf32> to vector<1x1xf32>
    %22 = vector.broadcast %21 : vector<1x1xf32> to vector<32x32xf32>
    %23 = arith.mulf %19, %22 : vector<32x32xf32>
    %c0_7 = arith.constant 0 : index
    %c0_8 = arith.constant 0 : index
    %24 = vector.load %arg4[%c0_7, %c0_8] : memref<32x1xf32, #tpu.memory_space<vmem>>, vector<32x1xf32>
    %25 = vector.broadcast %24 : vector<32x1xf32> to vector<32x32xf32>
    %26 = arith.addf %23, %25 : vector<32x32xf32>
    %cst = arith.constant 0.000000e+00 : f32
    %27 = vector.broadcast %cst : f32 to vector<32x32xf32>
    %28 = arith.maximumf %26, %27 : vector<32x32xf32>
    %c0_9 = arith.constant 0 : index
    %c0_10 = arith.constant 0 : index
    %c0_11 = arith.constant 0 : index
    %29 = vector.load %arg5[%c0_9, %c0_10, %c0_11] : memref<1x32x32xf32, #tpu.memory_space<vmem>>, vector<1x32x32xf32>
    %30 = vector.shape_cast %29 : vector<1x32x32xf32> to vector<32x32xf32>
    %31 = vector.shape_cast %28 : vector<32x32xf32> to vector<1x32x32xf32>
    tpu.vector_store %arg5[%c0_9, %c0_10, %c0_11], %31 {strides = array<i32>} : memref<1x32x32xf32, #tpu.memory_space<vmem>>, vector<1x32x32xf32>,
    return
  }
  func.func @transform_0(%arg0: i32) -> (i32, i32, i32) {
    %c0_i32 = arith.constant 0 : i32
    %c0_i32_0 = arith.constant 0 : i32
    %c0_i32_1 = arith.constant 0 : i32
    return %arg0, %c0_i32, %c0_i32_0 : i32, i32, i32
  }
  func.func @transform_1(%arg0: i32) -> (i32, i32, i32) {
    %c0_i32 = arith.constant 0 : i32
    %c0_i32_0 = arith.constant 0 : i32
    %c0_i32_1 = arith.constant 0 : i32
    return %arg0, %c0_i32, %c0_i32_0 : i32, i32, i32
  }
  func.func @transform_2(%arg0: i32) -> (i32, i32) {
    %c0_i32 = arith.constant 0 : i32
    %c0_i32_0 = arith.constant 0 : i32
    %c0_i32_1 = arith.constant 0 : i32
    return %c0_i32, %c0_i32_0 : i32, i32
  }
  func.func @transform_3(%arg0: i32) -> (i32, i32) {
    %c0_i32 = arith.constant 0 : i32
    %c0_i32_0 = arith.constant 0 : i32
    %c0_i32_1 = arith.constant 0 : i32
    return %c0_i32, %c0_i32_0 : i32, i32
  }
  func.func @transform_4(%arg0: i32) -> (i32, i32, i32) {
    %c0_i32 = arith.constant 0 : i32
    %c0_i32_0 = arith.constant 0 : i32
    %c0_i32_1 = arith.constant 0 : i32
    return %arg0, %c0_i32, %c0_i32_0 : i32, i32, i32
  }
}

</mosaic_0001>

<bundles_post_ra>
// kernel: tpu_custom_call.1
= control target key start
LH: loop header
LB: loop body
LE: loop exit
PB: predicated region body
PF: predicated region fallthrough
CT: control target
= control target key end

     0   :  { %9 = vsyncpa [#allocation3], 0  ;;  %s730_s0 = inlined_call_operand.vmem [shape: f32[2,3,32], index: 0, kind: input, shape index: {}]   ;;  %s731_s1 = inlined_call_operand.vmem [shape: f32[2,1,1], index: 1, kind: input, shape index: {}]   ;;  %s732_s2 = inlined_call_operand.vmem [shape: f32[32,3], index: 2, kind: input, shape index: {}]   ;;  %s733_s3 = inlined_call_operand.vmem [shape: f32[32,1], index: 3, kind: input, shape index: {}]   ;;  %s734_s4 = inlined_call_operand.hbm [shape: f32[2,32,32], index: 4, kind: output, shape index: {}]  }
   0x1   :  { %11 = vsyncpa [#allocation3 + $0x1], 0  ;;  %s589_s15 = smov 0   ;;  %s591_s16 = smov 0  }
   0x2   :  { %s593_s17 = smov 0   ;;  %s595_s18 = smov 0  }
   0x3 LB: > { %s610_s19 = sadd.s32 4294967295, %s556_s18   ;;  %s432_s20 = sadd.s32 4294967294, %s556_s18   ;;  %s556_s18 = sphi %s595_s18, %s740_s18   ;;  %s552_s17 = sphi %s593_s17, %s739_s17   ;;  %s548_s16 = sphi %s591_s16, %s738_s16   ;;  %s544_s15 = sphi %s589_s15, %s737_s15  }
   0x4   : > { %s614_s21 = sadd.s32 1, %s556_s18   ;;  %s118_s22 = sadd.s32 1, %s552_s17 }
   0x5   : > { %s115_s23 = ssub.s32 %s556_s18, %s614_s21  ;;  %p128_p0 = scmp.ne.s32.totalorder %s552_s17, %s548_s16 }
   0x6   : > { %p116_p1 = scmp.eq.s32.totalorder %s115_s23, 0  ;;  %p129_p2 = scmp.eq.s32.totalorder %s610_s19, 1 }
   0x7   : > { %p134_p3 = scmp.ne.s32.totalorder %s548_s16, %s544_s15  ;;  %p135_p4 = scmp.eq.s32.totalorder %s432_s20, 1 }
   0x8   : > { %s625_s24 = scalar_select %p116_p1, %s552_s17, %s118_s22  }
   0x9   : > { %p627_p5 = por %p129_p2, %p128_p0  ;;  %p631_p6 = por %p135_p4, %p134_p3 }
   0xa   : > { %p435_p7 = scmp.ge.s32.totalorder %s556_s18, 1  ;;  %p172_p8 = scmp.lt.s32.totalorder %s556_s18, 3 }
   0xc   : > { %p173_p9 = pnand %p435_p7, %p172_p8 }
   0xd   : > { %p200_p10 = scmp.lt.s32.totalorder (!%p173_p9), %s610_s19, 1  ;;  %s197_s8 = sand.u32 (!%p173_p9), 1, %s548_s16  }
   0xe   : > { %176 = sbr.rel (%p173_p9) target bundleno = 202 (0xca), region = 36  ;;  %s690_s22 = scalar_lea.sflag (!%p173_p9), [#allocation3], %s197_s8 }
   0xf   : > { %s561_s23 = smov (!%p173_p9), [#allocation2]  }
  0x10   : > { %s500_s27 = sshll.u32 (!%p173_p9), %s561_s23, 4  ;;  %s501_s27 = int_to_ptr.vmem [resolvable:$false] %s500_s27 }
  0x11   : > { %s502_s28 = scalar_lea.vmem (!%p173_p9), %s501_s27, 1024 }
  0x13   : > { %v210_v0 = vld [vmem:[%s732_s2 + $0x10] sm:$0xff]  ;;  %v208_v1 = vld [vmem:[%s732_s2] sm:$0xff]  ;;  %v558_v2 = vmov 1   ;;  %v559_v3 = vmov 0   ;;  %v211_v4 = vld [vmem:[%s732_s2 + $0x18] sm:$0xff]  ;;  %v560_v6 = vmov 2   ;;  %v232_v15 = vlaneseq }
  0x14   : > { %490 = vset.pattern.permute.xlu0 %v558_v2  ;;  %489 = vset.pattern.permute.xlu1 %v559_v3  ;;  %v209_v5 = vld [vmem:[%s732_s2 + $0x8] sm:$0xff]  ;;  %s651_s9 = scalar_select %p200_p10, %s610_s19, 1  ;;  %v312_v8 = vld [vmem:[%s733_s3 + $0x10] sm:$0xff]  ;;  %v310_v9 = vld [vmem:[%s733_s3] sm:$0xff]  ;;  %vm342_vm0 = vcmask 261120  }
  0x15   : > { %224 = vperm.xlu1 %489, %v210_v0   ;;  %241 = vperm.xlu0 %490, %v208_v1   ;;  %v311_v10 = vld [vmem:[%s733_s3 + $0x8] sm:$0xff]  ;;  %v313_v11 = vld [vmem:[%s733_s3 + $0x18] sm:$0xff]  ;;  %v233_v17 = vshrl.u32 %v232_v15, 7 }
  0x16   : > { %s206_s12 = scalar_lea.vmem %s731_s1, %s651_s9  ;;  %s437_s30 = sshll.u32 %s651_s9, 2 }
  0x17   : > { %v438_v7 = vld [vmem:[%s206_s12] ss:$0 sm:$0xff]  ;;  %s203_s7 = scalar_lea.vmem %s730_s0, %s437_s30  ;;  %v234_v20 = vsub.s32 0, %v233_v17  ;;  %v258_v21 = vsub.s32 1, %v233_v17  ;;  %v286_v24 = vsub.s32 2, %v233_v17  ;;  %s436_s9 = sshll.u32 %s197_s8, 5 }
  0x18   : > { %v207_v23 = vld [vmem:[%s203_s7] sm:$0x7]  ;;  %s199_s10 = scalar_lea.vmem [#allocation2], %s436_s9  ;;  %s444_s12 = sshll.u32 %s610_s19, 9 }
  0x19   : > { %229 = vperm.xlu1 %489, %v211_v4   ;;  %253 = vperm.xlu0 %490, %v211_v4   ;;  %v235_v26 = vrot.slane %v207_v23, %v234_v20  ;;  %v259_v27 = vrot.slane %v207_v23, %v258_v21  ;;  %v287_v28 = vrot.slane %v207_v23, %v286_v24  ;;  %s361_s11 = sshll.u32 %s199_s10, 4  ;;  %s685_s20 = scalar_lea.hbm %s734_s4, %s444_s12  ;;  %s680_s11 = int_to_ptr.vmem [resolvable:$true] %s361_s11 }
  0x1a   : > { %s496_s19 = scalar_lea.vmem %s680_s11, 512  ;;  %p503_p0 = scmp.lt.s32.totalorder %s680_s11, %s501_s27 }
  0x1b   : > { %p497_p11 = scmp.ne.s32.totalorder %s680_s11, %s496_s19  ;;  %p504_p1 = scmp.lt.s32.totalorder %s502_s28, %s496_s19 }
  0x1d   : > { %491 = vset.pattern.permute.xlu1 %v558_v2  ;;  %493 = vset.pattern.permute.xlu0 %v560_v6  ;;  %p498_p12 = pnand %p497_p11, %p627_p5  ;;  %p505_p2 = por %p504_p1, %p503_p0 }
  0x1e   : > { %245 = vperm.xlu1 %491, %v209_v5   ;;  %273 = vperm.xlu0 %493, %v209_v5  }
  0x1f   : > { %p499_p13 = pneg %p498_p12 }
  0x21   : > { %p506_p3 = pnand %p505_p2, %p499_p13 }
  0x22   : > { %249 = vperm.xlu1 %491, %v210_v0   ;;  %494 = vset.pattern.permute.xlu0 %v559_v3 }
  0x23   : > { %214 = vperm.xlu0 %494, %v208_v1  }
  0x26   : > { %492 = vset.pattern.permute.xlu1 %v560_v6 }
  0x27   : > { %269 = vperm.xlu1 %492, %v208_v1   ;;  %219 = vperm.xlu0 %494, %v209_v5  }
  0x2b   : > { %277 = vperm.xlu1 %492, %v210_v0   ;;  %303 = vperm.xlu0 %494, %v438_v7  }
  0x2f   : > { %281 = vperm.xlu1 %492, %v211_v4   ;;  %326 = vperm.xlu0 %494, %v312_v8  }
  0x33   : > { %495 = vset.pattern.permute.xlu1 %v559_v3 }
  0x34   : > { %316 = vperm.xlu1 %495, %v310_v9  }
  0x38   : > { %321 = vperm.xlu1 %495, %v311_v10  }
  0x3c   : > { %331 = vperm.xlu1 %495, %v313_v11  }
  0x90   : > { %v225_v12 = vpop.permute.xlu1 %224  ;;  %v242_v13 = vpop.permute.xlu0 %241 }
  0x91   : > { %v260_v32 = vmul.f32 %v259_v27, %v242_v13  ;;  %v238_v34 = vmul.f32 %v235_v26, %v225_v12 }
  0x94   : > { %v230_v14 = vpop.permute.xlu1 %229  ;;  %v254_v16 = vpop.permute.xlu0 %253 }
  0x95   : > { %v239_v50 = vmul.f32 %v235_v26, %v230_v14  ;;  %v263_v51 = vmul.f32 %v259_v27, %v254_v16 }
  0x97   : > { %v267_v58 = vadd.f32 %v263_v51, %v239_v50 }
  0x99   : > { %v246_v18 = vpop.permute.xlu1 %245  ;;  %v274_v19 = vpop.permute.xlu0 %273 }
  0x9a   : > { %v261_v41 = vmul.f32 %v259_v27, %v246_v18  ;;  %v289_v44 = vmul.f32 %v287_v28, %v274_v19 }
  0x9d   : > { %v250_v22 = vpop.permute.xlu1 %249 }
  0x9e   : > { %v215_v25 = vpop.permute.xlu0 %214  ;;  %v262_v31 = vmul.f32 %v259_v27, %v250_v22 }
  0x9f   : > { %v236_v33 = vmul.f32 %v235_v26, %v215_v25 }
  0xa0   : > { %v266_v39 = vadd.f32 %v262_v31, %v238_v34 }
  0xa1   : > { %v264_v42 = vadd.f32 %v260_v32, %v236_v33 }
  0xa2   : > { %v270_v29 = vpop.permute.xlu1 %269  ;;  %v220_v30 = vpop.permute.xlu0 %219 }
  0xa3   : > { %v288_v35 = vmul.f32 %v287_v28, %v270_v29  ;;  %v237_v36 = vmul.f32 %v235_v26, %v220_v30 }
  0xa5   : > { %v292_v45 = vadd.f32 %v288_v35, %v264_v42  ;;  %v265_v46 = vadd.f32 %v261_v41, %v237_v36 }
  0xa6   : > { %v278_v37 = vpop.permute.xlu1 %277  ;;  %v304_v38 = vpop.permute.xlu0 %303 }
  0xa7   : > { %v290_v40 = vmul.f32 %v287_v28, %v278_v37  ;;  %v306_v54 = vmul.f32 %v304_v38, %v292_v45  ;;  %v293_v55 = vadd.f32 %v289_v44, %v265_v46 }
  0xa9   : > { %v294_v43 = vadd.f32 %v290_v40, %v266_v39  ;;  %v307_v62 = vmul.f32 %v304_v38, %v293_v55 }
  0xaa   : > { %v282_v47 = vpop.permute.xlu1 %281  ;;  %v327_v48 = vpop.permute.xlu0 %326 }
  0xab   : > { %v308_v49 = vmul.f32 %v304_v38, %v294_v43  ;;  %v291_v53 = vmul.f32 %v287_v28, %v282_v47 }
  0xad   : > { %v336_v52 = vadd.f32 %v327_v48, %v308_v49  ;;  %v295_v60 = vadd.f32 %v291_v53, %v267_v58 }
  0xaf   : > { %v340_v56 = vmax.f32 %v336_v52, 0.0  ;;  %v317_v57 = vpop.permute.xlu1 %316  ;;  %v309_v2 = vmul.f32 %v304_v38, %v295_v60 }
  0xb0   : > { %v334_v59 = vadd.f32 %v317_v57, %v306_v54 }
  0xb1   : > { %345 = vst.msk [vmem:[%s199_s10 + $0x10] sm:$0xff] %vm342_vm0, %v340_v56 }
  0xb2   : > { %v338_v61 = vmax.f32 %v334_v59, 0.0 }
  0xb3   : > { %v322_v63 = vpop.permute.xlu1 %321 }
  0xb4   : > { %343 = vst.msk [vmem:[%s199_s10] sm:$0xff] %vm342_vm0, %v338_v61  ;;  %v335_v0 = vadd.f32 %v322_v63, %v307_v62 }
  0xb6   : > { %v339_v1 = vmax.f32 %v335_v0, 0.0 }
  0xb7   : > { %v332_v3 = vpop.permute.xlu1 %331 }
  0xb8   : > { %344 = vst.msk [vmem:[%s199_s10 + $0x8] sm:$0xff] %vm342_vm0, %v339_v1  ;;  %v337_v4 = vadd.f32 %v332_v3, %v309_v2 }
  0xba   : > { %v341_v5 = vmax.f32 %v337_v4, 0.0 }
  0xbc   : > { %346 = vst.msk [vmem:[%s199_s10 + $0x18] sm:$0xff] %vm342_vm0, %v341_v5 }
  0xbd   : > { %509 = shalt.err (!%p506_p3)
}
  0xbe   : > { %s510_s29 = scalar_lea.hbm %s685_s20, 512  ;;  %s514_s6 = scalar_lea.hbm %s734_s4, 1024 }
  0xbf   : > { %p511_p4 = scmp.ne.s32.totalorder %s685_s20, %s510_s29  ;;  %p515_p9 = scmp.lt.s32.totalorder %s685_s20, %s734_s4 }
  0xc0   : > { %p516_p10 = scmp.lt.s32.totalorder %s514_s6, %s510_s29 }
  0xc1   : > { %p512_p7 = pnand %p511_p4, %p627_p5 }
  0xc2   : > { %p517_p11 = por %p516_p10, %p515_p9 }
  0xc3   : > { %p513_p8 = pneg %p512_p7 }
  0xc5   : > { %p518_p12 = pnand %p517_p11, %p513_p8 }
  0xc7   : > { %521 = shalt.err (!%p518_p12)
}
  0xc8   : > { %s562_s9 = smov 128   ;;  %s563_s10 = smov 8  }
  0xc9   : > { %445 = dma.vmem_to_hbm [thread:$0]  (%p627_p5), %s680_s11, 512, %s685_s20, %s690_s22, %s562_s9, %s562_s9, %s563_s10  }
  0xca PF: > { %p451_p13 = scmp.ge.s32.totalorder %s556_s18, 2  ;;  %s376_s12 = sand.u32 1, %s544_s15  }
  0xcb   : > { %s377_s13 = scalar_lea.sflag [#allocation3], %s376_s12 }
  0xcc   : > { %p448_p0 = pnand %p451_p13, %p631_p6 }
  0xce   : > { %p449_p1 = pneg %p448_p0 }
  0xd0   : > { %539 = dma.done.wait (%p449_p1), %s377_s13, 512  }
  0xd1   : > { %541 = vsyncadd (%p449_p1), %s377_s13, 4294966784  ;;  %p14_p2 = scmp.ge.s32.totalorder %s614_s21, 4   ;;  %s737_s15 = smov %s548_s16 }
  0xd2   : > { %s738_s16 = smov %s552_s17  ;;  %s739_s17 = smov %s625_s24 }
  0xd3   : > { %s740_s18 = smov %s614_s21  ;;  %16 = sbr.rel (!%p14_p2) target bundleno = 3 (0x3), region = 74 }
  0xd8   :  { %382 = vsyncpa [#allocation3], 1 }
  0xd9   :  { %384 = vsyncpa [#allocation3 + $0x1], 1 }

</bundles_post_ra>
